<compile_context>
chip_gen: v5e
topology: v5e:2x2
jax: 0.10.0
libtpu: 0.0.40
codegen_flags: <defaults>
</compile_context>

<pallas_src>
import functools
import math

import jax
import jax.numpy as jnp
from jax.experimental import pallas as pl
from jax.experimental.pallas import tpu as pltpu

_LANE = 128


def _cdiv(a, b):
    return -(-a // b)


def _wce_tile_kernel(x_ref, t_ref, o_ref, *, C, rows_total, tile_rows, chunk_rows,
                     acc_rows, tiles_per_chunk, ignore_index):
    """Accumulate per-class partial sums for one (batch, chunk, row-tile) grid point.

    x_ref: (1, C, tile_rows, 128)      logits tile (HBM dtype; upcast per chunk)
    t_ref: (1, tile_rows, 128)         int32 targets tile
    o_ref: (1, 3, C, acc_rows, 128)    f32 accumulators, resident across the row-tile
                                       ("arbitrary") axis:
        [0] per-class logit sum        -> WCE class-weight denominator
        [1] per-class summed NLL
        [2] per-class valid-target count
    """
    j = pl.program_id(2)

    @pl.when(j == 0)
    def _init():
        o_ref[...] = jnp.zeros(o_ref.shape, o_ref.dtype)

    # Absolute row-tile index; phantom / partial tail tiles are fully masked below.
    tile_idx = pl.program_id(1) * tiles_per_chunk + j
    rows_left = rows_total - tile_idx * tile_rows        # real rows in this tile (may be <= 0)

    groups = chunk_rows // acc_rows

    def chunk_body(i):
        r0 = i * chunk_rows
        if not isinstance(r0, int):
            r0 = pl.multiple_of(r0, min(8, chunk_rows))

        x = x_ref[0, :, pl.ds(r0, chunk_rows), :].astype(jnp.float32)   # (C, ck, 128)
        t = t_ref[0, pl.ds(r0, chunk_rows), :]                          # (ck, 128) int32

        # Tail mask: rows past the true extent (non-divisible last tile or phantom
        # tiles of the parallel-chunk axis) contain stale VMEM data and must not
        # contribute to any accumulator.
        row_ids = jax.lax.broadcasted_iota(jnp.int32, (chunk_rows, _LANE), 0)
        row_ok = row_ids < (rows_left - r0)                              # (ck, 128) bool

        # Fold ignore_index and the tail mask into the targets once per chunk:
        # class id C never matches, so one compare drives both NLL and count.
        t_eff = jnp.where(row_ok & (t != ignore_index), t, C)           # (ck, 128)
        cls_ids = jax.lax.broadcasted_iota(jnp.int32, (C, chunk_rows, _LANE), 0)
        sel = cls_ids == t_eff[None]                                     # (C, ck, 128)

        # Mask the logits themselves so the per-class logit-sum stays exact on tails.
        x_m = jnp.where(row_ok[None], x, 0.0)                            # (C, ck, 128)

        # log-sum-exp over the class axis.  C is a leading (non-layout) dim, so these
        # are elementwise VALU/EUP ops over dense (ck, 128) vreg planes.
        m = jnp.max(x_m, axis=0)                                         # (ck, 128)
        lse = m + jnp.log(jnp.sum(jnp.exp(x_m - m[None]), axis=0))       # (ck, 128)

        nll = jnp.where(sel, lse[None] - x_m, 0.0)                       # (C, ck, 128)
        cnt = jnp.where(sel, 1.0, 0.0)                                   # (C, ck, 128)

        # Fold the chunk to (C, acc_rows, 128) sublane partials with sublane-aligned
        # vreg adds (no cross-sublane reduce), then accumulate into the resident block.
        o_ref[0, 0] += x_m.reshape(C, groups, acc_rows, _LANE).sum(axis=1)
        o_ref[0, 1] += nll.reshape(C, groups, acc_rows, _LANE).sum(axis=1)
        o_ref[0, 2] += cnt.reshape(C, groups, acc_rows, _LANE).sum(axis=1)

    num_chunks = tile_rows // chunk_rows
    if num_chunks == 1:
        chunk_body(0)
    else:
        def _loop(i, carry):
            chunk_body(i)
            return carry
        jax.lax.fori_loop(0, num_chunks, _loop, 0)


def weighted_cross_entropy_loss(logits, target, weight=None, ignore_index=-1):
    """JAX/Pallas equivalent of WeightedCrossEntropyLoss.forward (reduction='mean').

    logits: (N, C, *spatial) float array (f32 or bf16; kept in its HBM dtype)
    target: (N, *spatial) integer class indices
    weight: optional (C,) per-class multiplier (module.weight)

    NOTE: the WCE class weight (M - sum(x)) / sum(x) assumes probability-like inputs
    (as in the WCE paper); raw logits can give zero/negative denominators, exactly as
    the PyTorch module does.
    """
    N, C = int(logits.shape[0]), int(logits.shape[1])
    S = int(math.prod(logits.shape[2:])) if logits.ndim > 2 else 1
    m_total = N * S                           # true (unpadded) element count per class
    x_itemsize = jnp.dtype(logits.dtype).itemsize

    # Free, contiguous reshapes (no transpose): channel stays the 2nd axis.
    x3 = logits.reshape(N, C, S)
    t2 = target.reshape(N, S).astype(jnp.int32)

    # Pad ONLY to the next 128-lane boundary (no pad at all when already aligned, and
    # never rounded up to the tile size).  Padded logits are 0 (no contribution to the
    # per-class sums) and padded targets are ignore_index (no NLL / count), so results
    # stay exact.  Tile-boundary tails are handled in-kernel via row masking.
    s_pad = _cdiv(S, _LANE) * _LANE
    if s_pad != S:
        x3 = jnp.pad(x3, ((0, 0), (0, 0), (0, s_pad - S)))
        t2 = jnp.pad(t2, ((0, 0), (0, s_pad - S)), constant_values=ignore_index)

    rows = s_pad // _LANE
    x4 = x3.reshape(N, C, rows, _LANE)
    t3 = t2.reshape(N, rows, _LANE)

    # --- VMEM budget / tile sizing ------------------------------------------------
    try:
        vmem_cap = int(getattr(pltpu.get_tpu_info(), "vmem_capacity_bytes",
                               128 * 1024 * 1024))
    except Exception:                                   # interpret mode / query failure
        vmem_cap = 128 * 1024 * 1024
    vmem_limit = max(32 * 1024 * 1024, min(int(vmem_cap * 0.65), 100 * 1024 * 1024))
    # Per-buffer DMA budget for one (logits + targets) row-tile:
    #   ~8 MiB on 128-MiB-VMEM v5e/v6e, ~4 MiB on 64-MiB v7x.
    block_budget = max(1 << 20, min(8 << 20, vmem_limit // 10))
    bytes_per_row = _LANE * (C * x_itemsize + 4)        # logits + int32 targets per 128 lanes

    if rows < 8:
        # Tiny spatial extent: one full-extent block, accumulator matches its row count.
        acc_rows = chunk_rows = tile_rows = rows
    else:
        acc_rows = 8
        # Compute-chunk rows sized so per-chunk f32 temporaries stay ~vreg-resident.
        desired_chunk = 32 if C <= 3 else (16 if C <= 6 else 8)
        chunk_rows = min(desired_chunk, (rows // 8) * 8)
        budget_rows = max(chunk_rows, block_budget // bytes_per_row)
        tile_rows = (budget_rows // chunk_rows) * chunk_rows
        tile_rows = max(chunk_rows, min(tile_rows, (rows // chunk_rows) * chunk_rows))
    num_tiles = _cdiv(rows, tile_rows)

    # Extra parallel axis over spatial chunks so both v7x TensorCores are busy when N
    # is small (measured-neutral on single-TC v5e/v6e).
    if N >= 8 or num_tiles == 1:
        n_chunks = 1
    else:
        n_chunks = min(num_tiles, _cdiv(8, N))
        n_chunks = _cdiv(num_tiles, _cdiv(num_tiles, n_chunks))   # rebalance
    tiles_per_chunk = _cdiv(num_tiles, n_chunks)

    grid = (N, n_chunks, tiles_per_chunk)
    last_tile = num_tiles - 1

    # Clamp phantom row-tile indices (their contributions are fully masked in-kernel).
    def x_index(n, c, j):
        return (n, 0, jnp.minimum(c * tiles_per_chunk + j, last_tile), 0)

    def t_index(n, c, j):
        return (n, jnp.minimum(c * tiles_per_chunk + j, last_tile), 0)

    def o_index(n, c, j):
        return (n * n_chunks + c, 0, 0, 0, 0)

    cost = pl.CostEstimate(
        flops=int(10 * N * C * s_pad),
        transcendentals=int(N * (C + 1) * s_pad),
        bytes_accessed=int(N * C * s_pad * x_itemsize + N * s_pad * 4
                           + N * n_chunks * 3 * C * acc_rows * _LANE * 4),
    )

    kernel = functools.partial(
        _wce_tile_kernel, C=C, rows_total=rows, tile_rows=tile_rows,
        chunk_rows=chunk_rows, acc_rows=acc_rows,
        tiles_per_chunk=tiles_per_chunk, ignore_index=ignore_index)

    partials = pl.pallas_call(
        kernel,
        out_shape=jax.ShapeDtypeStruct((N * n_chunks, 3, C, acc_rows, _LANE),
                                       jnp.float32),
        grid=grid,
        in_specs=[
            pl.BlockSpec((1, C, tile_rows, _LANE), x_index),
            pl.BlockSpec((1, tile_rows, _LANE), t_index),
        ],
        out_specs=pl.BlockSpec((1, 3, C, acc_rows, _LANE), o_index),
        compiler_params=pltpu.CompilerParams(
            dimension_semantics=("parallel", "parallel", "arbitrary"),
            vmem_limit_bytes=vmem_limit,
        ),
        cost_estimate=cost,
    )(x4, t3)

    # Tiny epilogue: fold (batch*chunk, sublane, lane) partials, then apply the WCE
    # class weights once (matches _class_weights + weighted-mean F.cross_entropy).
    sums = jnp.sum(partials, axis=(0, 3, 4))            # (3, C)
    denom, nll_c, cnt_c = sums[0], sums[1], sums[2]
    class_w = (jnp.float32(m_total) - denom) / denom
    if weight is not None:
        class_w = class_w * weight.astype(jnp.float32)
    return jnp.sum(class_w * nll_c) / jnp.sum(class_w * cnt_c)


def _reference_loss(logits_nchw, target, weight, ignore_index=-1):
    """Pure-JAX reference mirroring the PyTorch module, for validation."""
    C = logits_nchw.shape[1]
    flattened = jnp.moveaxis(logits_nchw, 1, 0).reshape(C, -1)
    class_w = (1.0 - flattened).sum(-1) / flattened.sum(-1)
    if weight is not None:
        class_w = class_w * weight
    logp = jax.nn.log_softmax(logits_nchw, axis=1)
    valid = (target != ignore_index)
    t_safe = jnp.where(valid, target, 0)
    picked = jnp.take_along_axis(logp, t_safe[:, None], axis=1)[:, 0]  # (N, H, W)
    w_per = class_w[t_safe] * valid.astype(jnp.float32)
    return -(w_per * picked).sum() / w_per.sum()


if __name__ == "__main__":
    key = jax.random.PRNGKey(0)
    k1, k2, _ = jax.random.split(key, 3)

    N, C, H, W = 2, 4, 16, 16
    # Positive "probability-like" inputs (the WCE use-case) keep the per-class
    # denominator well away from zero for a stable test.
    x = jax.random.uniform(k1, (N, C, H, W), jnp.float32, minval=0.1, maxval=1.0)
    target = jax.random.randint(k2, (N, H, W), 0, C, dtype=jnp.int32)
    # Sprinkle some ignore_index entries.
    target = target.at[0, 0, :4].set(-1)
    target = target.at[1, 5, 7].set(-1)

    # Deterministic per-class weight buffer (module.weight, shape (C,)).
    weight = jnp.array([1.0, 0.5, 2.0, 1.5], dtype=jnp.float32)

    loss = weighted_cross_entropy_loss(x, target, weight=weight, ignore_index=-1)
    loss = jax.block_until_ready(loss)

    ref = _reference_loss(x, target, weight, ignore_index=-1)
    assert jnp.allclose(loss, ref, rtol=1e-4, atol=1e-5), (loss, ref)

    print("KERNEL_OK")
</pallas_src>

<mosaic_0001>
module attributes {stable_mosaic.version = 11 : i64} {
  func.func @_wce_tile_kernel(%arg0: i32, %arg1: i32, %arg2: i32, %arg3: memref<1x4x2x128xf32, #tpu.memory_space<vmem>>, %arg4: memref<1x2x128xi32, #tpu.memory_space<vmem>>, %arg5: memref<1x3x4x2x128xf32, #tpu.memory_space<vmem>>) attributes {dimension_semantics = [#tpu.dimension_semantics<parallel>, #tpu.dimension_semantics<parallel>, #tpu.dimension_semantics<arbitrary>], iteration_bounds = array<i64: 2, 1, 1>, scalar_prefetch = 0 : i64, scratch_operands = 0 : i64, tpu.core_type = #tpu.core_type<tc>, window_params = [{transform_indices = @transform_0, window_bounds = array<i64: 1, 4, 2, 128>}, {transform_indices = @transform_1, window_bounds = array<i64: 1, 2, 128>}, {transform_indices = @transform_2, window_bounds = array<i64: 1, 3, 4, 2, 128>}]} {
    %c0_i32 = arith.constant 0 : i32
    %0 = arith.cmpi eq, %arg2, %c0_i32 : i32
    %1 = arith.extui %0 : i1 to i32
    %c0_i32_0 = arith.constant 0 : i32
    %2 = arith.cmpi ne, %1, %c0_i32_0 : i32
    scf.if %2 {
      %cst_45 = arith.constant 0.000000e+00 : f32
      %69 = vector.broadcast %cst_45 : f32 to vector<1x3x4x2x128xf32>
      %c0_46 = arith.constant 0 : index
      %c0_47 = arith.constant 0 : index
      %c0_48 = arith.constant 0 : index
      %c0_49 = arith.constant 0 : index
      %c0_50 = arith.constant 0 : index
      %70 = vector.load %arg5[%c0_46, %c0_47, %c0_48, %c0_49, %c0_50] : memref<1x3x4x2x128xf32, #tpu.memory_space<vmem>>, vector<1x3x4x2x128xf32>
      tpu.vector_store %arg5[%c0_46, %c0_47, %c0_48, %c0_49, %c0_50], %69 {strides = array<i32>} : memref<1x3x4x2x128xf32, #tpu.memory_space<vmem>>, vector<1x3x4x2x128xf32>,
    } else {
    }
    %c1_i32 = arith.constant 1 : i32
    %3 = arith.muli %arg1, %c1_i32 : i32
    %4 = arith.addi %3, %arg2 : i32
    %c2_i32 = arith.constant 2 : i32
    %5 = arith.muli %4, %c2_i32 : i32
    %c2_i32_1 = arith.constant 2 : i32
    %6 = arith.subi %c2_i32_1, %5 : i32
    %c0 = arith.constant 0 : index
    %c0_2 = arith.constant 0 : index
    %c0_3 = arith.constant 0 : index
    %c0_4 = arith.constant 0 : index
    %7 = vector.load %arg3[%c0, %c0_2, %c0_3, %c0_4] : memref<1x4x2x128xf32, #tpu.memory_space<vmem>>, vector<1x4x2x128xf32>
    %8 = vector.shape_cast %7 : vector<1x4x2x128xf32> to vector<4x2x128xf32>
    %c0_5 = arith.constant 0 : index
    %c0_6 = arith.constant 0 : index
    %c0_7 = arith.constant 0 : index
    %9 = vector.load %arg4[%c0_5, %c0_6, %c0_7] : memref<1x2x128xi32, #tpu.memory_space<vmem>>, vector<1x2x128xi32>
    %10 = vector.shape_cast %9 : vector<1x2x128xi32> to vector<2x128xi32>
    %11 = tpu.iota {dimensions = array<i32: 0>} : vector<2x128xi32>
    %c0_i32_8 = arith.constant 0 : i32
    %12 = arith.subi %6, %c0_i32_8 : i32
    %13 = vector.broadcast %12 : i32 to vector<2x128xi32>
    %14 = arith.cmpi slt, %11, %13 : vector<2x128xi32>
    %c-1_i32 = arith.constant -1 : i32
    %15 = vector.broadcast %c-1_i32 : i32 to vector<2x128xi32>
    %16 = arith.cmpi ne, %10, %15 : vector<2x128xi32>
    %17 = arith.andi %14, %16 : vector<2x128xi1>
    %c4_i32 = arith.constant 4 : i32
    %18 = vector.broadcast %c4_i32 : i32 to vector<2x128xi32>
    %19 = arith.select %17, %10, %18 : vector<2x128xi1>, vector<2x128xi32>
    %20 = tpu.iota {dimensions = array<i32: 0>} : vector<4x2x128xi32>
    %21 = vector.shape_cast %19 : vector<2x128xi32> to vector<1x2x128xi32>
    %22 = vector.broadcast %21 : vector<1x2x128xi32> to vector<4x2x128xi32>
    %23 = arith.cmpi eq, %20, %22 : vector<4x2x128xi32>
    %24 = vector.shape_cast %14 : vector<2x128xi1> to vector<1x2x128xi1>
    %cst = arith.constant 0.000000e+00 : f32
    %25 = vector.shape_cast %24 : vector<1x2x128xi1> to vector<1x2x128xi1>
    %26 = vector.broadcast %25 : vector<1x2x128xi1> to vector<4x2x128xi1>
    %27 = vector.broadcast %cst : f32 to vector<4x2x128xf32>
    %28 = arith.select %26, %8, %27 : vector<4x2x128xi1>, vector<4x2x128xf32>
    %cst_9 = arith.constant dense<0xFF800000> : vector<2x128xf32>
    %29 = vector.multi_reduction <maximumf>, %28, %cst_9 [0] : vector<4x2x128xf32> to vector<2x128xf32>
    %30 = vector.shape_cast %29 : vector<2x128xf32> to vector<1x2x128xf32>
    %31 = vector.broadcast %30 : vector<1x2x128xf32> to vector<4x2x128xf32>
    %32 = arith.subf %28, %31 : vector<4x2x128xf32>
    %33 = math.exp %32 : vector<4x2x128xf32>
    %cst_10 = arith.constant dense<0.000000e+00> : vector<2x128xf32>
    %34 = vector.multi_reduction <add>, %33, %cst_10 [0] : vector<4x2x128xf32> to vector<2x128xf32>
    %35 = math.log %34 : vector<2x128xf32>
    %36 = arith.addf %29, %35 : vector<2x128xf32>
    %37 = vector.shape_cast %36 : vector<2x128xf32> to vector<1x2x128xf32>
    %38 = vector.broadcast %37 : vector<1x2x128xf32> to vector<4x2x128xf32>
    %39 = arith.subf %38, %28 : vector<4x2x128xf32>
    %cst_11 = arith.constant 0.000000e+00 : f32
    %40 = vector.broadcast %cst_11 : f32 to vector<4x2x128xf32>
    %41 = arith.select %23, %39, %40 : vector<4x2x128xi1>, vector<4x2x128xf32>
    %cst_12 = arith.constant 1.000000e+00 : f32
    %cst_13 = arith.constant 0.000000e+00 : f32
    %42 = vector.broadcast %cst_12 : f32 to vector<4x2x128xf32>
    %43 = vector.broadcast %cst_13 : f32 to vector<4x2x128xf32>
    %44 = arith.select %23, %42, %43 : vector<4x2x128xi1>, vector<4x2x128xf32>
    %c0_14 = arith.constant 0 : index
    %c0_15 = arith.constant 0 : index
    %c0_16 = arith.constant 0 : index
    %c0_17 = arith.constant 0 : index
    %c0_18 = arith.constant 0 : index
    %45 = vector.load %arg5[%c0_14, %c0_15, %c0_16, %c0_17, %c0_18] : memref<1x3x4x2x128xf32, #tpu.memory_space<vmem>>, vector<1x1x4x2x128xf32>
    %46 = vector.shape_cast %45 : vector<1x1x4x2x128xf32> to vector<4x2x128xf32>
    %47 = vector.shape_cast %28 : vector<4x2x128xf32> to vector<4x1x2x128xf32>
    %cst_19 = arith.constant dense<0.000000e+00> : vector<4x2x128xf32>
    %48 = vector.multi_reduction <add>, %47, %cst_19 [1] : vector<4x1x2x128xf32> to vector<4x2x128xf32>
    %49 = arith.addf %46, %48 : vector<4x2x128xf32>
    %c0_20 = arith.constant 0 : index
    %c0_21 = arith.constant 0 : index
    %c0_22 = arith.constant 0 : index
    %c0_23 = arith.constant 0 : index
    %c0_24 = arith.constant 0 : index
    %50 = vector.load %arg5[%c0_20, %c0_21, %c0_22, %c0_23, %c0_24] : memref<1x3x4x2x128xf32, #tpu.memory_space<vmem>>, vector<1x1x4x2x128xf32>
    %51 = vector.shape_cast %50 : vector<1x1x4x2x128xf32> to vector<4x2x128xf32>
    %52 = vector.shape_cast %49 : vector<4x2x128xf32> to vector<1x1x4x2x128xf32>
    tpu.vector_store %arg5[%c0_20, %c0_21, %c0_22, %c0_23, %c0_24], %52 {strides = array<i32>} : memref<1x3x4x2x128xf32, #tpu.memory_space<vmem>>, vector<1x1x4x2x128xf32>,
    %c0_25 = arith.constant 0 : index
    %c1 = arith.constant 1 : index
    %c0_26 = arith.constant 0 : index
    %c0_27 = arith.constant 0 : index
    %c0_28 = arith.constant 0 : index
    %53 = vector.load %arg5[%c0_25, %c1, %c0_26, %c0_27, %c0_28] : memref<1x3x4x2x128xf32, #tpu.memory_space<vmem>>, vector<1x1x4x2x128xf32>
    %54 = vector.shape_cast %53 : vector<1x1x4x2x128xf32> to vector<4x2x128xf32>
    %55 = vector.shape_cast %41 : vector<4x2x128xf32> to vector<4x1x2x128xf32>
    %cst_29 = arith.constant dense<0.000000e+00> : vector<4x2x128xf32>
    %56 = vector.multi_reduction <add>, %55, %cst_29 [1] : vector<4x1x2x128xf32> to vector<4x2x128xf32>
    %57 = arith.addf %54, %56 : vector<4x2x128xf32>
    %c0_30 = arith.constant 0 : index
    %c1_31 = arith.constant 1 : index
    %c0_32 = arith.constant 0 : index
    %c0_33 = arith.constant 0 : index
    %c0_34 = arith.constant 0 : index
    %58 = vector.load %arg5[%c0_30, %c1_31, %c0_32, %c0_33, %c0_34] : memref<1x3x4x2x128xf32, #tpu.memory_space<vmem>>, vector<1x1x4x2x128xf32>
    %59 = vector.shape_cast %58 : vector<1x1x4x2x128xf32> to vector<4x2x128xf32>
    %60 = vector.shape_cast %57 : vector<4x2x128xf32> to vector<1x1x4x2x128xf32>
    tpu.vector_store %arg5[%c0_30, %c1_31, %c0_32, %c0_33, %c0_34], %60 {strides = array<i32>} : memref<1x3x4x2x128xf32, #tpu.memory_space<vmem>>, vector<1x1x4x2x128xf32>,
    %c0_35 = arith.constant 0 : index
    %c2 = arith.constant 2 : index
    %c0_36 = arith.constant 0 : index
    %c0_37 = arith.constant 0 : index
    %c0_38 = arith.constant 0 : index
    %61 = vector.load %arg5[%c0_35, %c2, %c0_36, %c0_37, %c0_38] : memref<1x3x4x2x128xf32, #tpu.memory_space<vmem>>, vector<1x1x4x2x128xf32>
    %62 = vector.shape_cast %61 : vector<1x1x4x2x128xf32> to vector<4x2x128xf32>
    %63 = vector.shape_cast %44 : vector<4x2x128xf32> to vector<4x1x2x128xf32>
    %cst_39 = arith.constant dense<0.000000e+00> : vector<4x2x128xf32>
    %64 = vector.multi_reduction <add>, %63, %cst_39 [1] : vector<4x1x2x128xf32> to vector<4x2x128xf32>
    %65 = arith.addf %62, %64 : vector<4x2x128xf32>
    %c0_40 = arith.constant 0 : index
    %c2_41 = arith.constant 2 : index
    %c0_42 = arith.constant 0 : index
    %c0_43 = arith.constant 0 : index
    %c0_44 = arith.constant 0 : index
    %66 = vector.load %arg5[%c0_40, %c2_41, %c0_42, %c0_43, %c0_44] : memref<1x3x4x2x128xf32, #tpu.memory_space<vmem>>, vector<1x1x4x2x128xf32>
    %67 = vector.shape_cast %66 : vector<1x1x4x2x128xf32> to vector<4x2x128xf32>
    %68 = vector.shape_cast %65 : vector<4x2x128xf32> to vector<1x1x4x2x128xf32>
    tpu.vector_store %arg5[%c0_40, %c2_41, %c0_42, %c0_43, %c0_44], %68 {strides = array<i32>} : memref<1x3x4x2x128xf32, #tpu.memory_space<vmem>>, vector<1x1x4x2x128xf32>,
    return
  }
  func.func @transform_0(%arg0: i32, %arg1: i32, %arg2: i32) -> (i32, i32, i32, i32) {
    %c1_i32 = arith.constant 1 : i32
    %0 = arith.muli %arg1, %c1_i32 : i32
    %1 = arith.addi %0, %arg2 : i32
    %c0_i32 = arith.constant 0 : i32
    %2 = arith.minsi %1, %c0_i32 : i32
    %c0_i32_0 = arith.constant 0 : i32
    %c0_i32_1 = arith.constant 0 : i32
    %c0_i32_2 = arith.constant 0 : i32
    return %arg0, %c0_i32_0, %2, %c0_i32_1 : i32, i32, i32, i32
  }
  func.func @transform_1(%arg0: i32, %arg1: i32, %arg2: i32) -> (i32, i32, i32) {
    %c1_i32 = arith.constant 1 : i32
    %0 = arith.muli %arg1, %c1_i32 : i32
    %1 = arith.addi %0, %arg2 : i32
    %c0_i32 = arith.constant 0 : i32
    %2 = arith.minsi %1, %c0_i32 : i32
    %c0_i32_0 = arith.constant 0 : i32
    %c0_i32_1 = arith.constant 0 : i32
    return %arg0, %2, %c0_i32_0 : i32, i32, i32
  }
  func.func @transform_2(%arg0: i32, %arg1: i32, %arg2: i32) -> (i32, i32, i32, i32, i32) {
    %c1_i32 = arith.constant 1 : i32
    %0 = arith.muli %arg0, %c1_i32 : i32
    %1 = arith.addi %0, %arg1 : i32
    %c0_i32 = arith.constant 0 : i32
    %c0_i32_0 = arith.constant 0 : i32
    %c0_i32_1 = arith.constant 0 : i32
    %c0_i32_2 = arith.constant 0 : i32
    %c0_i32_3 = arith.constant 0 : i32
    return %1, %c0_i32, %c0_i32_0, %c0_i32_1, %c0_i32_2 : i32, i32, i32, i32, i32
  }
}

</mosaic_0001>

<bundles_post_ra>
// kernel: tpu_custom_call.1
= control target key start
LH: loop header
LB: loop body
LE: loop exit
PB: predicated region body
PF: predicated region fallthrough
CT: control target
= control target key end

     0   :  { %7 = vsyncpa [#allocation3], 0  ;;  %s1062_s0 = inlined_call_operand.hbm [shape: f32[2,4,2,128], index: 0, kind: input, shape index: {}]   ;;  %s1063_s1 = inlined_call_operand.hbm [shape: s32[2,2,128], index: 1, kind: input, shape index: {}]   ;;  %s1064_s2 = inlined_call_operand.hbm [shape: f32[2,3,4,2,128], index: 2, kind: output, shape index: {}]  }
   0x1   :  { %9 = vsyncpa [#allocation3 + $0x1], 0 }
   0x2   :  { %10 = vsyncpa [#allocation6], 0 }
   0x3   :  { %12 = vsyncpa [#allocation6 + $0x1], 0 }
   0x4   :  { %13 = vsyncpa [#allocation4], 0 }
   0x5   :  { %15 = vsyncpa [#allocation4 + $0x1], 0  ;;  %s800_s9 = smov 0   ;;  %s802_s10 = smov 0  }
   0x6   :  { %s804_s11 = smov 0   ;;  %s806_s12 = smov 0  }
   0x7   :  { %s808_s13 = smov 0   ;;  %s810_s14 = smov 0  }
   0x8 LB: > { %s516_s15 = sadd.s32 4294967295, %s778_s14   ;;  %s517_s16 = sadd.s32 4294967294, %s778_s14   ;;  %s778_s14 = sphi %s810_s14, %s21_s14   ;;  %s774_s13 = sphi %s808_s13, %s1074_s13   ;;  %s770_s12 = sphi %s806_s12, %s1073_s12   ;;  %s766_s11 = sphi %s804_s11, %s1072_s11   ;;  %s762_s10 = sphi %s802_s10, %s1071_s10   ;;  %s758_s9 = sphi %s800_s9, %s1070_s9  }
   0x9   : > { %s40_s17 = sadd.s32 1, %s774_s13  ;;  %s55_s18 = sadd.s32 1, %s766_s11 }
   0xa   : > { %p42_p0 = scmp.ge.s32.totalorder %s40_s17, 2  ;;  %p62_p1 = scmp.ne.s32.totalorder %s766_s11, %s762_s10 }
   0xb   : > { %p63_p2 = scmp.eq.s32.totalorder %s778_s14, 0  ;;  %p68_p3 = scmp.ne.s32.totalorder %s762_s10, %s758_s9 }
   0xc   : > { %s1076_s17 = smov (%p42_p0, %s40_s17), 0  ;;  %p69_p5 = scmp.eq.s32.totalorder %s516_s15, 0 }
   0xd   : > { %p841_p4 = por %p63_p2, %p62_p1  ;;  %s50_s20 = ssub.s32 %s774_s13, %s1076_s17 }
   0xe   : > { %p128_p6 = scmp.eq.s32.totalorder %s516_s15, 1  ;;  %p53_p7 = scmp.eq.s32.totalorder %s50_s20, 0 }
   0xf   : > { %p847_p8 = por %p69_p5, %p68_p3  ;;  %p134_p10 = scmp.eq.s32.totalorder %s517_s16, 1 }
  0x10   : > { %p851_p9 = por %p128_p6, %p62_p1  ;;  %p519_p12 = scmp.ge.s32.totalorder %s778_s14, 2 }
  0x11   : > { %s856_s23 = scalar_select %p53_p7, %s766_s11, %s55_s18  }
  0x12   : > { %p858_p11 = por %p134_p10, %p68_p3  ;;  %p567_p13 = scmp.lt.s32.totalorder %s778_s14, 2 }
  0x13   : > { %s154_s25 = sand.u32 1, %s766_s11   ;;  %s547_s27 = sshll.u32 %s774_s13, 3 }
  0x14   : > { %s520_s26 = sshll.u32 %s154_s25, 3  ;;  %s167_s30 = scalar_lea.hbm %s1062_s0, %s547_s27 }
  0x15   : > { %s158_s3 = scalar_lea.vmem [#allocation2], %s520_s26  ;;  %s168_s5 = sshll.u32 %s167_s30, 4  ;;  %s169_s5 = int_to_ptr.hbm [resolvable:$true] %s168_s5 }
  0x16   : > { %s170_s4 = sshll.u32 %s158_s3, 4  ;;  %p871_p0 = pnand %p567_p13, %p841_p4  ;;  %s171_s4 = int_to_ptr.vmem [resolvable:$true] %s170_s4 }
  0x17   : > { %p525_p1 = scmp.ge.s32.totalorder %s778_s14, 1  ;;  %s155_s7 = scalar_lea.sflag [#allocation3], %s154_s25 }
  0x18   : > { %s780_s8 = smov 32   ;;  %s781_s15 = smov 2  }
  0x19   : > { %559 = dma.hbm_to_vmem [thread:$0]  (!%p871_p0), %s169_s5, 128, %s171_s4, %s155_s7, %s780_s8, %s780_s8, %s781_s15  }
  0x1a   : > { %p201_p2 = scmp.lt.s32.totalorder %s778_s14, 3  ;;  %s523_s16 = sshll.u32 %s154_s25, 1 }
  0x1b   : > { %s524_s18 = sshll.u32 %s774_s13, 1  ;;  %s184_s27 = scalar_lea.vmem [#allocation5], %s523_s16 }
  0x1c   : > { %p202_p3 = pnand %p525_p1, %p201_p2  ;;  %s192_s19 = scalar_lea.hbm %s1063_s1, %s524_s18 }
  0x1d   : > { %s196_s28 = sshll.u32 %s184_s27, 4  ;;  %s194_s29 = sshll.u32 %s192_s19, 4  ;;  %s197_s28 = int_to_ptr.vmem [resolvable:$true] %s196_s28  ;;  %s195_s29 = int_to_ptr.hbm [resolvable:$true] %s194_s29 }
  0x1e   : > { %s181_s30 = scalar_lea.sflag [#allocation6], %s154_s25  ;;  %205 = sbr.rel (%p202_p3) target bundleno = 92 (0x5c), region = 28 }
  0x1f   : > { %562 = dma.hbm_to_vmem [thread:$0]  (!%p871_p0), %s195_s29, 32, %s197_s28, %s181_s30  }
  0x20   : > { %s886_s3 = sand.u32 (!%p202_p3), 1, %s762_s10  }
  0x21   : > { %s526_s4 = sshll.u32 (!%p202_p3), %s886_s3, 3  ;;  %s208_s5 = scalar_lea.sflag (!%p202_p3), [#allocation3], %s886_s3 }
  0x22   : > { %s890_s7 = scalar_lea.vmem (!%p202_p3), [#allocation2], %s526_s4 }
  0x23   : > { %745 = dma.done.wait (%p847_p8), %s208_s5, 128  }
  0x24   : > { %747 = vsyncadd (%p847_p8), %s208_s5, 4294967168  ;;  %s527_s25 = sshll.u32 %s886_s3, 1  ;;  %s218_s6 = scalar_lea.sflag [#allocation6], %s886_s3 }
  0x25   : > { %s898_s8 = scalar_lea.vmem [#allocation5], %s527_s25 }
  0x26   : > { %749 = dma.done.wait (%p847_p8), %s218_s6, 32  }
  0x27   : > { %751 = vsyncadd (%p847_p8), %s218_s6, 4294967264  ;;  %s548_s15 = smul.u32 24, %s886_s3  ;;  %v279_v0 = vlaneseq  ;;  %v782_v2 = vmov 0.0   ;;  %vm296_vm1 = vcmask 1041408   ;;  %v274_v3 = vld [vmem:[%s890_s7] sm:$0x3] }
  0x28   : > { %v275_v4 = vld [vmem:[%s890_s7 + $0x2] sm:$0x3]  ;;  %v276_v7 = vld [vmem:[%s890_s7 + $0x4] sm:$0x3]  ;;  %v277_v15 = vld [vmem:[%s890_s7 + $0x6] sm:$0x3] }
  0x29   : > { %v280_v1 = vshrl.u32 %v279_v0, 7  ;;  %s905_s16 = scalar_lea.vmem [#allocation7], %s548_s15  ;;  %v278_v25 = vld [vmem:[%s898_s8] sm:$0x3]  ;;  %s549_s21 = smul.u32 24, %s770_s12 }
  0x2a   : > { %259 = vst [vmem:[%s905_s16] sm:$0x3] %v782_v2  ;;  %vm283_vm2 = vcmp.ne.s32.totalorder %v278_v25, 4294967295  ;;  %s402_s12 = sshll.u32 %s905_s16, 4  ;;  %s389_s27 = scalar_lea.sflag [#allocation4], %s886_s3  ;;  %s403_s12 = int_to_ptr.vmem [resolvable:$true] %s402_s12 }
  0x2b   : > { %260 = vst [vmem:[%s905_s16 + $0x2] sm:$0x3] %v782_v2  ;;  %vm282_vm0 = vcmp.lt.s32.totalorder %v280_v1, 2  ;;  %s401_s26 = scalar_lea.hbm %s1064_s2, %s549_s21  ;;  %s712_s5 = scalar_lea.hbm %s1064_s2, 48 }
  0x2c   : > { %261 = vst [vmem:[%s905_s16 + $0x4] sm:$0x3] %v782_v2  ;;  %v922_v5 = vsel %vm282_vm0, %v274_v3, 0.0  ;;  %v925_v6 = vsel %vm282_vm0, %v275_v4, 0.0  ;;  %v935_v10 = vsel %vm282_vm0, %v276_v7, 0.0  ;;  %v952_v19 = vsel %vm282_vm0, %v277_v15, 0.0  ;;  %vm284_vm3 = vmand %vm282_vm0, %vm283_vm2 }
  0x2d   : > { %262 = vst [vmem:[%s905_s16 + $0x6] sm:$0x3] %v782_v2  ;;  %v297_v8 = vsel %vm296_vm1, %v922_v5, -inf  ;;  %v298_v9 = vsel %vm296_vm1, %v925_v6, -inf  ;;  %v299_v12 = vsel %vm296_vm1, %v935_v10, -inf  ;;  %v300_v21 = vsel %vm296_vm1, %v952_v19, -inf }
  0x2e   : > { %263 = vst [vmem:[%s905_s16 + $0x8] sm:$0x3] %v782_v2  ;;  %v301_v16 = vmax.f32 %v297_v8, %v298_v9  ;;  %v302_v23 = vmax.f32 %v299_v12, %v300_v21  ;;  %v968_v27 = vsel %vm284_vm3, %v278_v25, 4  ;;  %s404_s19 = sshll.u32 %s401_s26, 4  ;;  %s405_s19 = int_to_ptr.hbm [resolvable:$true] %s404_s19 }
  0x2f   : > { %264 = vst [vmem:[%s905_s16 + $0xa] sm:$0x3] %v782_v2  ;;  %vm286_vm4 = vcmp.eq.s32.totalorder %v968_v27, 0  ;;  %vm287_vm5 = vcmp.eq.s32.totalorder %v968_v27, 1  ;;  %vm288_vm6 = vcmp.eq.s32.totalorder %v968_v27, 2  ;;  %vm289_vm7 = vcmp.eq.s32.totalorder %v968_v27, 3 }
  0x30   : > { %265 = vst [vmem:[%s905_s16 + $0xc] sm:$0x3] %v782_v2  ;;  %v303_v26 = vmax.f32 %v301_v16, %v302_v23  ;;  %v334_v36 = vsel %vm286_vm4, 1.0, %v782_v2  ;;  %v335_v37 = vsel %vm287_vm5, 1.0, %v782_v2  ;;  %v336_v40 = vsel %vm288_vm6, 1.0, %v782_v2  ;;  %s706_s28 = sshra.s32 %s405_s19, 4  ;;  %s707_s28 = int_to_ptr.hbm [resolvable:$true] %s706_s28 }
  0x31   : > { %266 = vst [vmem:[%s905_s16 + $0xe] sm:$0x3] %v782_v2  ;;  %v338_v11 = vld [vmem:[%s905_s16] sm:$0x3]  ;;  %v337_v41 = vsel %vm289_vm7, 1.0, %v782_v2  ;;  %s708_s29 = scalar_lea.hbm %s707_s28, 24  ;;  %p713_p7 = scmp.lt.s32.totalorder %s707_s28, %s1064_s2 }
  0x32   : > { %267 = vst [vmem:[%s905_s16 + $0x10] sm:$0x3] %v782_v2  ;;  %v346_v13 = vadd.f32 %v338_v11, %v922_v5  ;;  %v339_v14 = vld [vmem:[%s905_s16 + $0x2] sm:$0x3]  ;;  %v304_v28 = vsub.f32 %v922_v5, %v303_v26  ;;  %v305_v29 = vsub.f32 %v925_v6, %v303_v26  ;;  %v306_v30 = vsub.f32 %v935_v10, %v303_v26  ;;  %p709_p4 = scmp.ne.s32.totalorder %s707_s28, %s708_s29  ;;  %p714_p8 = scmp.lt.s32.totalorder %s712_s5, %s708_s29 }
  0x33   : > { %268 = vst [vmem:[%s905_s16 + $0x12] sm:$0x3] %v782_v2  ;;  %v347_v17 = vadd.f32 %v339_v14, %v925_v6  ;;  %v340_v18 = vld [vmem:[%s905_s16 + $0x4] sm:$0x3]  ;;  %v307_v31 = vsub.f32 %v952_v19, %v303_v26 }
  0x34   : > { %269 = vst [vmem:[%s905_s16 + $0x14] sm:$0x3] %v782_v2  ;;  %v348_v20 = vadd.f32 %v340_v18, %v935_v10  ;;  %v341_v22 = vld [vmem:[%s905_s16 + $0x6] sm:$0x3]  ;;  %v308_v32 = vmul.f32 1.442695, %v304_v28  ;;  %p710_p5 = pnand %p709_p4, %p851_p9  ;;  %p715_p10 = por %p714_p8, %p713_p7 }
  0x35   : > { %270 = vst [vmem:[%s905_s16 + $0x16] sm:$0x3] %v782_v2  ;;  %v349_v24 = vadd.f32 %v341_v22, %v952_v19  ;;  %v310_v33 = vmul.f32 1.442695, %v305_v29  ;;  %v312_v34 = vmul.f32 1.442695, %v306_v30 }
  0x36   : > { %350 = vst [vmem:[%s905_s16] sm:$0x3] %v346_v13  ;;  %v314_v35 = vmul.f32 1.442695, %v307_v31  ;;  %622 = vpow2.f32 %v308_v32  ;;  %v528_v63 = vld [vmem:[%s905_s16 + $0x8] sm:$0x3]  ;;  %p711_p6 = pneg %p710_p5 }
  0x37   : > { %351 = vst [vmem:[%s905_s16 + $0x2] sm:$0x3] %v347_v17  ;;  %624 = vpow2.f32 %v310_v33  ;;  %v529_v1 = vld [vmem:[%s905_s16 + $0xa] sm:$0x3]  ;;  %v530_v3 = vld [vmem:[%s905_s16 + $0xc] sm:$0x3] }
  0x38   : > { %352 = vst [vmem:[%s905_s16 + $0x4] sm:$0x3] %v348_v20  ;;  %626 = vpow2.f32 %v312_v34  ;;  %v531_v7 = vld [vmem:[%s905_s16 + $0xe] sm:$0x3]  ;;  %p716_p13 = pnand %p715_p10, %p711_p6 }
  0x39   : > { %353 = vst [vmem:[%s905_s16 + $0x6] sm:$0x3] %v349_v24  ;;  %v536_v38 = vld [vmem:[%s905_s16 + $0x10] sm:$0x3]  ;;  %628 = vpow2.f32 %v314_v35 }
  0x3a   : > { %v537_v39 = vld [vmem:[%s905_s16 + $0x12] sm:$0x3]  ;;  %v380_v42 = vadd.f32 %v536_v38, %v334_v36 }
  0x3b   : > { %v381_v43 = vadd.f32 %v537_v39, %v335_v37  ;;  %v538_v44 = vld [vmem:[%s905_s16 + $0x14] sm:$0x3] }
  0x3c   : > { %v539_v45 = vld [vmem:[%s905_s16 + $0x16] sm:$0x3]  ;;  %v382_v46 = vadd.f32 %v538_v44, %v336_v40  ;;  %540 = vst [vmem:[%s905_s16 + $0x10] sm:$0x3] %v380_v42  ;;  %v623_v48 = vpop.eup %622 }
  0x3d   : > { %v383_v47 = vadd.f32 %v539_v45, %v337_v41  ;;  %541 = vst [vmem:[%s905_s16 + $0x12] sm:$0x3] %v381_v43  ;;  %v625_v49 = vpop.eup %624  ;;  %v316_v50 = vsel %vm296_vm1, %v623_v48, 0.0 }
  0x3e   : > { %542 = vst [vmem:[%s905_s16 + $0x14] sm:$0x3] %v382_v46  ;;  %v627_v51 = vpop.eup %626  ;;  %v317_v52 = vsel %vm296_vm1, %v625_v49, 0.0 }
  0x3f   : > { %543 = vst [vmem:[%s905_s16 + $0x16] sm:$0x3] %v383_v47  ;;  %v629_v53 = vpop.eup %628  ;;  %v318_v54 = vadd.f32 %v317_v52, %v316_v50  ;;  %v319_v55 = vsel %vm296_vm1, %v627_v51, 0.0 }
  0x40   : > { %v321_v56 = vsel %vm296_vm1, %v629_v53, 0.0 }
  0x41   : > { %v320_v57 = vadd.f32 %v319_v55, %v318_v54 }
  0x43   : > { %v322_v58 = vadd.f32 %v321_v56, %v320_v57 }
  0x45   : > { %630 = vlog2.f32 %v322_v58 }
  0x4b   : > { %v631_v59 = vpop.eup %630 }
  0x4c   : > { %v324_v60 = vmul.f32 0.6931472, %v631_v59 }
  0x4e   : > { %v325_v61 = vadd.f32 %v324_v60, %v303_v26 }
  0x50   : > { %v326_v62 = vsub.f32 %v325_v61, %v922_v5  ;;  %v327_v0 = vsub.f32 %v325_v61, %v925_v6  ;;  %v328_v2 = vsub.f32 %v325_v61, %v935_v10  ;;  %v329_v4 = vsub.f32 %v325_v61, %v952_v19 }
  0x52   : > { %v330_v5 = vsel %vm286_vm4, %v326_v62, 0.0  ;;  %v331_v6 = vsel %vm287_vm5, %v327_v0, 0.0  ;;  %v332_v8 = vsel %vm288_vm6, %v328_v2, 0.0  ;;  %v333_v9 = vsel %vm289_vm7, %v329_v4, 0.0 }
  0x53   : > { %v363_v10 = vadd.f32 %v528_v63, %v330_v5  ;;  %v364_v11 = vadd.f32 %v529_v1, %v331_v6  ;;  %v365_v12 = vadd.f32 %v530_v3, %v332_v8  ;;  %v366_v13 = vadd.f32 %v531_v7, %v333_v9 }
  0x55   : > { %532 = vst [vmem:[%s905_s16 + $0x8] sm:$0x3] %v363_v10 }
  0x56   : > { %533 = vst [vmem:[%s905_s16 + $0xa] sm:$0x3] %v364_v11 }
  0x57   : > { %534 = vst [vmem:[%s905_s16 + $0xc] sm:$0x3] %v365_v12 }
  0x58   : > { %535 = vst [vmem:[%s905_s16 + $0xe] sm:$0x3] %v366_v13 }
  0x59   : > { %719 = shalt.err (!%p716_p13)
}
  0x5a   : > { %s783_s3 = smov 32   ;;  %s784_s6 = smov 2  }
  0x5b   : > { %554 = dma.vmem_to_hbm [thread:$0]  (%p851_p9), %s403_s12, 384, %s405_s19, %s389_s27, %s783_s3, %s783_s3, %s784_s6  }
  0x5c PF: > { %s419_s8 = sand.u32 1, %s758_s9   ;;  %p564_p0 = pnand %p519_p12, %p858_p11 }
  0x5d   : > { %s420_s15 = scalar_lea.sflag [#allocation4], %s419_s8 }
  0x5e   : > { %p565_p1 = pneg %p564_p0 }
  0x60   : > { %753 = dma.done.wait (%p565_p1), %s420_s15, 384  }
  0x61   : > { %755 = vsyncadd (%p565_p1), %s420_s15, 4294966912  ;;  %s21_s14 = sadd.s32 1, %s778_s14   ;;  %s1070_s9 = smov %s762_s10 }
  0x62   : > { %p18_p2 = scmp.ge.s32.totalorder %s21_s14, 4   ;;  %s1071_s10 = smov %s766_s11 }
  0x63   : > { %s1072_s11 = smov %s856_s23  ;;  %s1073_s12 = smov %s774_s13 }
  0x64   : > { %s1074_s13 = smov %s1076_s17  ;;  %20 = sbr.rel (!%p18_p2) target bundleno = 8 (0x8), region = 92 }
  0x69   :  { %426 = vsyncpa [#allocation3], 1 }
  0x6a   :  { %428 = vsyncpa [#allocation3 + $0x1], 1 }
  0x6b   :  { %429 = vsyncpa [#allocation6], 1 }
  0x6c   :  { %431 = vsyncpa [#allocation6 + $0x1], 1 }
  0x6d   :  { %432 = vsyncpa [#allocation4], 1 }
  0x6e   :  { %434 = vsyncpa [#allocation4 + $0x1], 1 }

</bundles_post_ra>
